<compile_context>
chip_gen: v7x
topology: tpu7x:2x2x1
jax: 0.10.0
libtpu: 0.0.40
codegen_flags: <defaults>
</compile_context>

<pallas_src>
import jax
import jax.numpy as jnp
from jax.experimental import pallas as pl
from jax.experimental.pallas import tpu as pltpu

EPS = 1e-5
DIMS = [28, 32, 64, 24, 12, 6, 1]          # fc1..fc6 feature sizes (in/out chain)
MAX_BATCH_TILE = 4096                      # sweep 2048..8192 per chip
MIN_TILES = 4                              # keep >=4 steps for v7x megacore + pipelining

# Packed-weight row layout: each layer's out-rows start at an 8-aligned offset.
_PAD_OUT = [-(-d // 8) * 8 for d in DIMS[1:]]          # [32, 64, 24, 16, 8, 8]
_ROW_OFF = [0]
for _p in _PAD_OUT:
    _ROW_OFF.append(_ROW_OFF[-1] + _p)                 # [0,32,96,120,136,144,152]
_WPACK_ROWS = _ROW_OFF[-1]                             # 152
_WPACK_COLS = max(DIMS[:-1])                           # 64


# ----------------------------- Pallas kernel ------------------------------ #
def _mlp_kernel(x_ref, wpack_ref, bpack_ref, o_ref):
    """Fused forward for one (batch_tile, 28) block of x.

    Activations run in batch-in-lanes layout (features, batch_tile): lane axis
    = batch (dense, multiple of 128), sublane axis = features.  BN is already
    folded into (W, b), dropout is identity (eval mode).
    """
    cdt = x_ref.dtype                       # compute dtype follows the input
    xblk = x_ref[...]                       # (BT, 28), native row-major
    wp = wpack_ref[...]                     # (152, 64) f32, all folded weights
    bp = bpack_ref[...]                     # (152, 1)  f32, all folded biases

    def w(k):                               # folded weight of layer k (0-based)
        r0 = _ROW_OFF[k]
        return wp[r0:r0 + DIMS[k + 1], :DIMS[k]].astype(cdt)

    def b(k):                               # folded bias (out, 1), f32
        r0 = _ROW_OFF[k]
        return bp[r0:r0 + DIMS[k + 1], :]

    # fc1: contract the 28-feature axis of both operands (== W1 @ xblk^T).
    # This puts the batch in lanes without materializing a transpose.
    z = jax.lax.dot_general(w(0), xblk, (((1,), (1,)), ((), ())),
                            preferred_element_type=jnp.float32)
    h = jnp.maximum(z + b(0), 0.0).astype(cdt)          # (32, BT)

    for k in range(1, 5):                                # fc2..fc5 (+ReLU)
        z = jnp.dot(w(k), h, preferred_element_type=jnp.float32) + b(k)
        h = jnp.maximum(z, 0.0).astype(cdt)

    z = jnp.dot(w(5), h, preferred_element_type=jnp.float32) + b(5)   # (1, BT)
    o_ref[...] = jax.nn.sigmoid(z).astype(o_ref.dtype)   # lane-dense store


# ------------------- BN folding + operand packing (once) ------------------- #
def pack_params(params, eps=EPS):
    """Fold eval-mode BatchNorm into the next Linear and pack all layers.

    BN after layer k:  y = s*a + t,  s = gamma/sqrt(var+eps), t = beta - mean*s
    Fold into layer k+1:  W' = W diag(s),  b' = W t + b   (exact in eval mode).

    Returns:
      wpack: (152, 64) f32 — layer k occupies rows [_ROW_OFF[k], +out_k), cols [0, in_k)
      bpack: (152, 1)  f32 — matching bias rows
    """
    wpack = jnp.zeros((_WPACK_ROWS, _WPACK_COLS), jnp.float32)
    bpack = jnp.zeros((_WPACK_ROWS, 1), jnp.float32)
    for k in range(6):                                   # fc_{k+1}
        w = jnp.asarray(params[f"w{k + 1}"], jnp.float32)   # (out, in), PyTorch layout
        b = jnp.asarray(params[f"b{k + 1}"], jnp.float32)   # (out,)
        if k > 0:                                        # fold bn_{k} (follows ReLU_k)
            s = params[f"gamma{k}"] / jnp.sqrt(params[f"rvar{k}"] + eps)
            t = params[f"beta{k}"] - params[f"rmean{k}"] * s
            b = w @ t + b                                # uses the ORIGINAL W
            w = w * s[None, :]                           # scale input columns
        out, fin = w.shape
        r0 = _ROW_OFF[k]
        wpack = wpack.at[r0:r0 + out, :fin].set(w)
        bpack = bpack.at[r0:r0 + out, 0].set(b)
    return wpack, bpack


# ------------------------------ wrapper ----------------------------------- #
def _choose_tile(batch):
    """Pick a 128-multiple batch tile: large for DMA efficiency, but keeping
    >= MIN_TILES grid steps when the batch allows (v7x megacore + pipelining)."""
    bt = pl.cdiv(batch, MIN_TILES)
    bt = -(-bt // 128) * 128
    bt = max(128, min(bt, MAX_BATCH_TILE))
    n_tiles = pl.cdiv(batch, bt)
    return bt, n_tiles


@jax.jit
def model2_forward(x, wpack, bpack):
    """x: (B, 28) float32 or bfloat16.  Returns (B, 1) float32 probabilities."""
    B, f_in = x.shape
    assert f_in == DIMS[0]

    bt, n_tiles = _choose_tile(B)
    Bp = bt * n_tiles
    if Bp != B:                                         # ragged tail: zero-pad rows
        x = jnp.pad(x, ((0, Bp - B), (0, 0)))

    out = pl.pallas_call(
        _mlp_kernel,
        out_shape=jax.ShapeDtypeStruct((1, Bp), jnp.float32),
        grid_spec=pltpu.PrefetchScalarGridSpec(
            num_scalar_prefetch=0,
            grid=(n_tiles,),
            in_specs=[
                # native row-major x: last dim 28 == full array dim -> (8,128) rule OK
                pl.BlockSpec((bt, DIMS[0]), lambda i: (i, 0)),
                # packed constants, constant block index (full-array blocks)
                pl.BlockSpec((_WPACK_ROWS, _WPACK_COLS), lambda i: (0, 0)),
                pl.BlockSpec((_WPACK_ROWS, 1), lambda i: (0, 0)),
            ],
            out_specs=pl.BlockSpec((1, bt), lambda i: (0, i)),
        ),
        compiler_params=pltpu.CompilerParams(
            dimension_semantics=("parallel",),           # shard tiles over v7x's 2 TCs
            vmem_limit_bytes=32 * 1024 * 1024,           # v5e scoped default is 16 MiB
        ),
    )(x, wpack, bpack)

    return out[0, :B].reshape(B, 1)                      # tiny, fuses under jit


# -------------------------- deterministic params --------------------------- #
def init_params(key):
    params = {}
    for layer in range(1, 7):
        fan_in, fan_out = DIMS[layer - 1], DIMS[layer]
        key, kw, kb = jax.random.split(key, 3)
        bound = 1.0 / jnp.sqrt(fan_in)
        # PyTorch nn.Linear convention: weight is (out_features, in_features)
        params[f"w{layer}"] = jax.random.uniform(
            kw, (fan_out, fan_in), jnp.float32, -bound, bound)
        params[f"b{layer}"] = jax.random.uniform(
            kb, (fan_out,), jnp.float32, -bound, bound)
        if layer <= 5:  # BN layers bn1..bn5
            key, kg, kbt, km, kv = jax.random.split(key, 5)
            params[f"gamma{layer}"] = 1.0 + 0.1 * jax.random.normal(kg, (fan_out,), jnp.float32)
            params[f"beta{layer}"] = 0.1 * jax.random.normal(kbt, (fan_out,), jnp.float32)
            params[f"rmean{layer}"] = 0.05 * jax.random.normal(km, (fan_out,), jnp.float32)
            params[f"rvar{layer}"] = 1.0 + 0.1 * jnp.abs(jax.random.normal(kv, (fan_out,), jnp.float32))
    return params


# ----------------------------- reference (JAX) ----------------------------- #
def reference_forward(x, params):
    h = x.astype(jnp.float32)
    for layer in range(1, 6):
        h = jnp.maximum(h @ params[f"w{layer}"].T + params[f"b{layer}"], 0.0)
        g, bt = params[f"gamma{layer}"], params[f"beta{layer}"]
        m, v = params[f"rmean{layer}"], params[f"rvar{layer}"]
        h = (h - m) / jnp.sqrt(v + EPS) * g + bt
    h = h @ params["w6"].T + params["b6"]
    return jax.nn.sigmoid(h)


if __name__ == "__main__":
    key = jax.random.PRNGKey(0)
    key, kx = jax.random.split(key)
    params = init_params(key)
    wpack, bpack = pack_params(params)               # hoisted out of per-call path

    # f32 path; B=512 -> batch_tile=128, 4 parallel grid steps (v7x-friendly)
    B = 512
    x = jax.random.normal(kx, (B, DIMS[0]), jnp.float32)
    out = jax.block_until_ready(model2_forward(x, wpack, bpack))
    ref = reference_forward(x, params)
    assert out.shape == (B, 1)
    assert jnp.allclose(out, ref, atol=5e-4, rtol=5e-4), "f32 mismatch vs reference"

    # ragged batch -> exercises the zero-padded tail tile
    x2 = x[:300]
    out2 = jax.block_until_ready(model2_forward(x2, wpack, bpack))
    ref2 = reference_forward(x2, params)
    assert out2.shape == (300, 1)
    assert jnp.allclose(out2, ref2, atol=5e-4, rtol=5e-4), "ragged-batch mismatch"

    # bf16-input path (halves the dominant x HBM read; f32 MXU accumulation)
    out3 = jax.block_until_ready(model2_forward(x.astype(jnp.bfloat16), wpack, bpack))
    assert out3.shape == (B, 1)
    assert float(jnp.max(jnp.abs(out3 - ref))) < 5e-2, "bf16 path diverged"

    print("KERNEL_OK")
</pallas_src>

<mosaic_0001>
module attributes {stable_mosaic.version = 11 : i64} {
  func.func @_mlp_kernel(%arg0: i32, %arg1: memref<128x28xf32, #tpu.memory_space<vmem>>, %arg2: memref<152x64xf32, #tpu.memory_space<vmem>>, %arg3: memref<152x1xf32, #tpu.memory_space<vmem>>, %arg4: memref<1x128xf32, #tpu.memory_space<vmem>>) attributes {dimension_semantics = [#tpu.dimension_semantics<parallel>], iteration_bounds = array<i64: 4>, scalar_prefetch = 0 : i64, scratch_operands = 0 : i64, tpu.core_type = #tpu.core_type<tc>, window_params = [{transform_indices = @transform_0, window_bounds = array<i64: 128, 28>}, {pipeline_mode = #tpu.pipeline_mode<synchronous>, transform_indices = @transform_1, window_bounds = array<i64: 152, 64>}, {pipeline_mode = #tpu.pipeline_mode<synchronous>, transform_indices = @transform_2, window_bounds = array<i64: 152, 1>}, {transform_indices = @transform_3, window_bounds = array<i64: 1, 128>}]} {
    %c0 = arith.constant 0 : index
    %c0_0 = arith.constant 0 : index
    %0 = vector.load %arg1[%c0, %c0_0] : memref<128x28xf32, #tpu.memory_space<vmem>>, vector<128x28xf32>
    %c0_1 = arith.constant 0 : index
    %c0_2 = arith.constant 0 : index
    %1 = vector.load %arg2[%c0_1, %c0_2] : memref<152x64xf32, #tpu.memory_space<vmem>>, vector<152x64xf32>
    %c0_3 = arith.constant 0 : index
    %c0_4 = arith.constant 0 : index
    %2 = vector.load %arg3[%c0_3, %c0_4] : memref<152x1xf32, #tpu.memory_space<vmem>>, vector<152x1xf32>
    %3 = vector.extract_strided_slice %1 {offsets = [0, 0], sizes = [32, 28], strides = [1, 1]} : vector<152x64xf32> to vector<32x28xf32>
    %cst = arith.constant dense<0.000000e+00> : vector<32x128xf32>
    %4 = tpu.matmul %3, %0, %cst {dimension_numbers = #tpu.dot_dimension_numbers<[1], [1], [0], [0], [0, 0, 1, 0], [], []>} : vector<32x28xf32>, vector<128x28xf32>, vector<32x128xf32> -> vector<32x128xf32>
    %5 = vector.extract_strided_slice %2 {offsets = [0, 0], sizes = [32, 1], strides = [1, 1]} : vector<152x1xf32> to vector<32x1xf32>
    %6 = vector.broadcast %5 : vector<32x1xf32> to vector<32x128xf32>
    %7 = arith.addf %4, %6 : vector<32x128xf32>
    %cst_5 = arith.constant 0.000000e+00 : f32
    %8 = vector.broadcast %cst_5 : f32 to vector<32x128xf32>
    %9 = arith.maximumf %7, %8 : vector<32x128xf32>
    %10 = vector.extract_strided_slice %1 {offsets = [32, 0], sizes = [64, 32], strides = [1, 1]} : vector<152x64xf32> to vector<64x32xf32>
    %cst_6 = arith.constant dense<0.000000e+00> : vector<64x128xf32>
    %11 = tpu.matmul %10, %9, %cst_6 {dimension_numbers = #tpu.dot_dimension_numbers<[1], [0], [0], [1], [0, 0, 1, 1], [], []>} : vector<64x32xf32>, vector<32x128xf32>, vector<64x128xf32> -> vector<64x128xf32>
    %12 = vector.extract_strided_slice %2 {offsets = [32, 0], sizes = [64, 1], strides = [1, 1]} : vector<152x1xf32> to vector<64x1xf32>
    %13 = vector.broadcast %12 : vector<64x1xf32> to vector<64x128xf32>
    %14 = arith.addf %11, %13 : vector<64x128xf32>
    %cst_7 = arith.constant 0.000000e+00 : f32
    %15 = vector.broadcast %cst_7 : f32 to vector<64x128xf32>
    %16 = arith.maximumf %14, %15 : vector<64x128xf32>
    %17 = vector.extract_strided_slice %1 {offsets = [96, 0], sizes = [24, 64], strides = [1, 1]} : vector<152x64xf32> to vector<24x64xf32>
    %cst_8 = arith.constant dense<0.000000e+00> : vector<24x128xf32>
    %18 = tpu.matmul %17, %16, %cst_8 {dimension_numbers = #tpu.dot_dimension_numbers<[1], [0], [0], [1], [0, 0, 1, 1], [], []>} : vector<24x64xf32>, vector<64x128xf32>, vector<24x128xf32> -> vector<24x128xf32>
    %19 = vector.extract_strided_slice %2 {offsets = [96, 0], sizes = [24, 1], strides = [1, 1]} : vector<152x1xf32> to vector<24x1xf32>
    %20 = vector.broadcast %19 : vector<24x1xf32> to vector<24x128xf32>
    %21 = arith.addf %18, %20 : vector<24x128xf32>
    %cst_9 = arith.constant 0.000000e+00 : f32
    %22 = vector.broadcast %cst_9 : f32 to vector<24x128xf32>
    %23 = arith.maximumf %21, %22 : vector<24x128xf32>
    %24 = vector.extract_strided_slice %1 {offsets = [120, 0], sizes = [12, 24], strides = [1, 1]} : vector<152x64xf32> to vector<12x24xf32>
    %cst_10 = arith.constant dense<0.000000e+00> : vector<12x128xf32>
    %25 = tpu.matmul %24, %23, %cst_10 {dimension_numbers = #tpu.dot_dimension_numbers<[1], [0], [0], [1], [0, 0, 1, 1], [], []>} : vector<12x24xf32>, vector<24x128xf32>, vector<12x128xf32> -> vector<12x128xf32>
    %26 = vector.extract_strided_slice %2 {offsets = [120, 0], sizes = [12, 1], strides = [1, 1]} : vector<152x1xf32> to vector<12x1xf32>
    %27 = vector.broadcast %26 : vector<12x1xf32> to vector<12x128xf32>
    %28 = arith.addf %25, %27 : vector<12x128xf32>
    %cst_11 = arith.constant 0.000000e+00 : f32
    %29 = vector.broadcast %cst_11 : f32 to vector<12x128xf32>
    %30 = arith.maximumf %28, %29 : vector<12x128xf32>
    %31 = vector.extract_strided_slice %1 {offsets = [136, 0], sizes = [6, 12], strides = [1, 1]} : vector<152x64xf32> to vector<6x12xf32>
    %cst_12 = arith.constant dense<0.000000e+00> : vector<6x128xf32>
    %32 = tpu.matmul %31, %30, %cst_12 {dimension_numbers = #tpu.dot_dimension_numbers<[1], [0], [0], [1], [0, 0, 1, 1], [], []>} : vector<6x12xf32>, vector<12x128xf32>, vector<6x128xf32> -> vector<6x128xf32>
    %33 = vector.extract_strided_slice %2 {offsets = [136, 0], sizes = [6, 1], strides = [1, 1]} : vector<152x1xf32> to vector<6x1xf32>
    %34 = vector.broadcast %33 : vector<6x1xf32> to vector<6x128xf32>
    %35 = arith.addf %32, %34 : vector<6x128xf32>
    %cst_13 = arith.constant 0.000000e+00 : f32
    %36 = vector.broadcast %cst_13 : f32 to vector<6x128xf32>
    %37 = arith.maximumf %35, %36 : vector<6x128xf32>
    %38 = vector.extract_strided_slice %1 {offsets = [144, 0], sizes = [1, 6], strides = [1, 1]} : vector<152x64xf32> to vector<1x6xf32>
    %cst_14 = arith.constant dense<0.000000e+00> : vector<1x128xf32>
    %39 = tpu.matmul %38, %37, %cst_14 {dimension_numbers = #tpu.dot_dimension_numbers<[1], [0], [0], [1], [0, 0, 1, 1], [], []>} : vector<1x6xf32>, vector<6x128xf32>, vector<1x128xf32> -> vector<1x128xf32>
    %40 = vector.extract_strided_slice %2 {offsets = [144, 0], sizes = [1, 1], strides = [1, 1]} : vector<152x1xf32> to vector<1x1xf32>
    %41 = vector.broadcast %40 : vector<1x1xf32> to vector<1x128xf32>
    %42 = arith.addf %39, %41 : vector<1x128xf32>
    %43 = arith.negf %42 : vector<1x128xf32>
    %44 = math.exp %43 : vector<1x128xf32>
    %cst_15 = arith.constant 1.000000e+00 : f32
    %45 = vector.broadcast %cst_15 : f32 to vector<1x128xf32>
    %46 = arith.addf %45, %44 : vector<1x128xf32>
    %47 = arith.divf %45, %46 : vector<1x128xf32>
    %c0_16 = arith.constant 0 : index
    %c0_17 = arith.constant 0 : index
    %48 = vector.load %arg4[%c0_16, %c0_17] : memref<1x128xf32, #tpu.memory_space<vmem>>, vector<1x128xf32>
    tpu.vector_store %arg4[%c0_16, %c0_17], %47 {strides = array<i32>} : memref<1x128xf32, #tpu.memory_space<vmem>>, vector<1x128xf32>,
    return
  }
  func.func @transform_0(%arg0: i32) -> (i32, i32) {
    %c0_i32 = arith.constant 0 : i32
    %c0_i32_0 = arith.constant 0 : i32
    return %arg0, %c0_i32 : i32, i32
  }
  func.func @transform_1(%arg0: i32) -> (i32, i32) {
    %c0_i32 = arith.constant 0 : i32
    %c0_i32_0 = arith.constant 0 : i32
    %c0_i32_1 = arith.constant 0 : i32
    return %c0_i32, %c0_i32_0 : i32, i32
  }
  func.func @transform_2(%arg0: i32) -> (i32, i32) {
    %c0_i32 = arith.constant 0 : i32
    %c0_i32_0 = arith.constant 0 : i32
    %c0_i32_1 = arith.constant 0 : i32
    return %c0_i32, %c0_i32_0 : i32, i32
  }
  func.func @transform_3(%arg0: i32) -> (i32, i32) {
    %c0_i32 = arith.constant 0 : i32
    %c0_i32_0 = arith.constant 0 : i32
    return %c0_i32, %arg0 : i32, i32
  }
}

</mosaic_0001>

<bundles_post_ra>
// kernel: model2_forward.1
= control target key start
LH: loop header
LB: loop body
LE: loop exit
PB: predicated region body
PF: predicated region fallthrough
CT: control target
= control target key end

     0   :  { %8 = vsyncpa [#allocation3], 0  ;;  %s1735_s0 = inlined_call_operand.vmem [shape: f32[512,28], index: 0, kind: input, shape index: {}]   ;;  %s1736_s1 = inlined_call_operand.vmem [shape: f32[152,64], index: 1, kind: input, shape index: {}]   ;;  %s1737_s2 = inlined_call_operand.vmem [shape: f32[152,1], index: 2, kind: input, shape index: {}]   ;;  %s1738_s3 = inlined_call_operand.hbm [shape: f32[1,512], index: 3, kind: output, shape index: {}]  }
   0x1   :  { %10 = vsyncpa [#allocation3 + $0x1], 0  ;;  %s1436_s12 = smov 0   ;;  %s1438_s13 = smov 0  }
   0x2   :  { %s1440_s14 = smov 0   ;;  %s1442_s15 = smov 0  }
   0x3 LB: > { %s1015_s16 = sadd.s32 4294967295, %s1408_s15   ;;  %s1016_s17 = sadd.s32 4294967294, %s1408_s15   ;;  %s1408_s15 = sphi %s1442_s15, %s1746_s15   ;;  %s1404_s14 = sphi %s1440_s14, %s1745_s14   ;;  %s1400_s13 = sphi %s1438_s13, %s1744_s13   ;;  %s1396_s12 = sphi %s1436_s12, %s1743_s12  }
   0x4   : > { %s1459_s18 = sadd.s32 1, %s1408_s15   ;;  %s91_s19 = sadd.s32 1, %s1404_s14 }
   0x5   : > { %s88_s20 = ssub.s32 %s1408_s15, %s1459_s18  ;;  %p101_p0 = scmp.ne.s32.totalorder %s1404_s14, %s1400_s13 }
   0x6   : > { %p89_p1 = scmp.eq.s32.totalorder %s88_s20, 0  ;;  %p102_p2 = scmp.eq.s32.totalorder %s1015_s16, 3 }
   0x7   : > { %p107_p3 = scmp.ne.s32.totalorder %s1400_s13, %s1396_s12  ;;  %p108_p4 = scmp.eq.s32.totalorder %s1016_s17, 3 }
   0x8   : > { %s1469_s21 = scalar_select %p89_p1, %s1404_s14, %s91_s19  }
   0x9   : > { %p1471_p5 = por %p102_p2, %p101_p0  ;;  %p1475_p6 = por %p108_p4, %p107_p3 }
   0xa   : > { %p1019_p7 = scmp.ge.s32.totalorder %s1408_s15, 1  ;;  %p141_p8 = scmp.lt.s32.totalorder %s1408_s15, 5 }
   0xc   : > { %p142_p9 = pnand %p1019_p7, %p141_p8 }
   0xd   : > { %s1481_s24 = sshll.u32 (!%p142_p9), %s1015_s16, 4  ;;  %vm244_vm0 = vcmask (!%p142_p9), 228352   ;;  %v186_v0 = vld [vmem:[%s1736_s1] sm:$0xff] (!%p142_p9)  ;;  %v1410_v1 = vmov (!%p142_p9), 0   ;;  %v207_v3 = vld [vmem:[%s1737_s2 + $0x10] sm:$0xff] (!%p142_p9)  ;;  %v206_v4 = vld [vmem:[%s1737_s2 + $0x8] sm:$0xff] (!%p142_p9) }
   0xe   : > { %145 = sbr.rel (%p142_p9) target bundleno = 1474 (0x5c2), region = 32  ;;  %p165_p10 = scmp.lt.s32.totalorder (!%p142_p9), %s1481_s24, 63  ;;  %1148 = vmatprep.mubr.msk.f32.mxu0 (!%p142_p9), %vm244_vm0, %v186_v0  ;;  %1340 = vset.pattern.permute.xlu0 (!%p142_p9), %v1410_v1  ;;  %v205_v2 = vld [vmem:[%s1737_s2] sm:$0xff] (!%p142_p9)  ;;  %v208_v5 = vld [vmem:[%s1737_s2 + $0x18] sm:$0xff] (!%p142_p9)  ;;  %vm1508_vm1 = vmpackc.low (!%p142_p9), %vm244_vm0, %vm244_vm0  ;;  %vm434_vm2 = vcmask (!%p142_p9), 261120   ;;  %vm1412_vm3 = vmmov (!%p142_p9), 0  }
   0xf   : > { %226 = vperm.xlu0 (!%p142_p9), %1340, %v205_v2   ;;  %1341 = vset.pattern.permute.xlu1 (!%p142_p9), %v1410_v1  ;;  %v209_v7 = vld [vmem:[%s1737_s2 + $0x20] sm:$0xff] (!%p142_p9)  ;;  %v210_v13 = vld [vmem:[%s1737_s2 + $0x28] sm:$0xff] (!%p142_p9)  ;;  %v211_v15 = vld [vmem:[%s1737_s2 + $0x30] sm:$0xff] (!%p142_p9)  ;;  %vm587_vm4 = vcmask (!%p142_p9), 523264   ;;  %vm690_vm5 = vcmask (!%p142_p9), 195584   ;;  %vm783_vm6 = vcmask (!%p142_p9), 1043456   ;;  %s1693_s17 = scalar_lea.hbm (!%p142_p9), %s1738_s3, %s1481_s24 }
  0x10   : > { %236 = vperm.xlu1 (!%p142_p9), %1341, %v207_v3   ;;  %v212_v16 = vld [vmem:[%s1737_s2 + $0x38] sm:$0xff] (!%p142_p9)  ;;  %v213_v19 = vld [vmem:[%s1737_s2 + $0x40] sm:$0xff] (!%p142_p9)  ;;  %v214_v21 = vld [vmem:[%s1737_s2 + $0x48] sm:$0xff] (!%p142_p9)  ;;  %vm1414_vm7 = vmmov (!%p142_p9), 1   ;;  %vm779_vm9 = vcmask (!%p142_p9), 97280   ;;  %vm867_vm10 = vcmask (!%p142_p9), 1045504  }
  0x11   : > { %v215_v22 = vld [vmem:[%s1737_s2 + $0x50] sm:$0xff] (!%p142_p9)  ;;  %v216_v23 = vld [vmem:[%s1737_s2 + $0x58] sm:$0xff] (!%p142_p9)  ;;  %v217_v26 = vld [vmem:[%s1737_s2 + $0x60] sm:$0xff] (!%p142_p9)  ;;  %vm863_vm11 = vcmask (!%p142_p9), 48128   ;;  %s162_s8 = sand.u32 (!%p142_p9), 1, %s1400_s13   ;;  %s1415_s25 = smov (!%p142_p9), [#allocation2]  }
  0x12   : > { %v218_v28 = vld [vmem:[%s1737_s2 + $0x68] sm:$0xff] (!%p142_p9)  ;;  %v219_v29 = vld [vmem:[%s1737_s2 + $0x70] sm:$0xff] (!%p142_p9)  ;;  %v220_v30 = vld [vmem:[%s1737_s2 + $0x78] sm:$0xff] (!%p142_p9)  ;;  %s949_s19 = scalar_lea.sflag (!%p142_p9), [#allocation3], %s162_s8  ;;  %s1350_s26 = sshll.u32 (!%p142_p9), %s1415_s25, 4  ;;  %s1351_s26 = int_to_ptr.vmem [resolvable:$false] %s1350_s26 }
  0x13   : > { %231 = vperm.xlu0 (!%p142_p9), %1340, %v206_v4   ;;  %v221_v33 = vld [vmem:[%s1737_s2 + $0x80] sm:$0xff] (!%p142_p9)  ;;  %v222_v35 = vld [vmem:[%s1737_s2 + $0x88] sm:$0xff] (!%p142_p9)  ;;  %v223_v36 = vld [vmem:[%s1737_s2 + $0x90] sm:$0xff] (!%p142_p9)  ;;  %s1352_s27 = scalar_lea.vmem (!%p142_p9), %s1351_s26, 32 }
  0x14   : > { %241 = vperm.xlu1 (!%p142_p9), %1341, %v208_v5   ;;  %v187_v46 = vld [vmem:[%s1736_s1 + $0x8] sm:$0xff] (!%p142_p9)  ;;  %v188_v47 = vld [vmem:[%s1736_s1 + $0x10] sm:$0xff] (!%p142_p9)  ;;  %v189_v48 = vld [vmem:[%s1736_s1 + $0x18] sm:$0xff] (!%p142_p9) }
  0x15   : > { %s166_s4 = scalar_select %p165_p10, %s1481_s24, 63  ;;  %v190_v49 = vld [vmem:[%s1736_s1 + $0x20] sm:$0xff]  ;;  %v191_v4 = vld [vmem:[%s1736_s1 + $0x28] sm:$0xff]  ;;  %v192_v5 = vld [vmem:[%s1736_s1 + $0x30] sm:$0xff] }
  0x16   : > { %1162 = vmatprep.mubr.msk.f32.mxu1 %vm434_vm2, %v190_v49  ;;  %v193_v6 = vld [vmem:[%s1736_s1 + $0x38] sm:$0xff]  ;;  %v198_v49 = vld [vmem:[%s1736_s1 + $0x60] sm:$0xff]  ;;  %vm1294_vm8 = vmpackc.low %vm783_vm6, %vm1414_vm7 }
  0x17   : > { %s1021_s9 = sshll.u32 %s166_s4, 3  ;;  %396 = vperm.xlu0 %1340, %v209_v7   ;;  %v194_v7 = vld [vmem:[%s1736_s1 + $0x40] sm:$0xff] }
  0x18   : > { %s1504_s16 = scalar_lea.vmem %s1735_s0, %s1021_s9  ;;  %401 = vperm.xlu1 %1341, %v210_v13   ;;  %s163_s9 = scalar_lea.vmem [#allocation2], %s162_s8 }
  0x19   : > { %v170_v8 = vld [vmem:[%s1504_s16] sm:$0xff]  ;;  %v171_v9 = vld [vmem:[%s1504_s16 + $0x8] sm:$0xff]  ;;  %v172_v10 = vld [vmem:[%s1504_s16 + $0x10] sm:$0xff]  ;;  %s961_s10 = sshll.u32 %s163_s9, 4  ;;  %s1695_s10 = int_to_ptr.vmem [resolvable:$true] %s961_s10 }
  0x1a   : > { %v1220_v11 = vpack.c.bf16 %v171_v9, %v170_v8  ;;  %v173_v12 = vld [vmem:[%s1504_s16 + $0x18] sm:$0xff]  ;;  %v174_v17 = vld [vmem:[%s1504_s16 + $0x20] sm:$0xff]  ;;  %v175_v18 = vld [vmem:[%s1504_s16 + $0x28] sm:$0xff]  ;;  %s1346_s20 = scalar_lea.vmem %s1695_s10, 16  ;;  %p1353_p0 = scmp.lt.s32.totalorder %s1695_s10, %s1351_s26 }
  0x1b   : > { %v1226_v14 = vpack.c.bf16 %v173_v12, %v172_v10  ;;  %406 = vperm.xlu0 %1340, %v211_v15   ;;  %v1232_v20 = vpack.c.bf16 %v175_v18, %v174_v17  ;;  %v176_v24 = vld [vmem:[%s1504_s16 + $0x30] sm:$0xff]  ;;  %v177_v25 = vld [vmem:[%s1504_s16 + $0x38] sm:$0xff]  ;;  %v178_v31 = vld [vmem:[%s1504_s16 + $0x40] sm:$0xff]  ;;  %v1413_v12 = vmov 0.0   ;;  %p1347_p11 = scmp.ne.s32.totalorder %s1695_s10, %s1346_s20  ;;  %p1354_p1 = scmp.lt.s32.totalorder %s1352_s27, %s1346_s20 }
  0x1c   : > { %1222 = vmatprep.subr.msk.bf16.mxu0 %vm1508_vm1, %v1220_v11  ;;  %411 = vperm.xlu1 %1341, %v212_v16   ;;  %v1238_v27 = vpack.c.bf16 %v177_v25, %v176_v24  ;;  %v179_v32 = vld [vmem:[%s1504_s16 + $0x48] sm:$0xff]  ;;  %v180_v37 = vld [vmem:[%s1504_s16 + $0x50] sm:$0xff]  ;;  %v181_v38 = vld [vmem:[%s1504_s16 + $0x58] sm:$0xff] }
  0x1d   : > { %1225 = vmatpush3.bf16.xpose.msk.msra.mxu0 %vm1508_vm1, %v1220_v11  ;;  %v1244_v34 = vpack.c.bf16 %v179_v32, %v178_v31  ;;  %v1250_v39 = vpack.c.bf16 %v181_v38, %v180_v37  ;;  %v182_v40 = vld [vmem:[%s1504_s16 + $0x60] sm:$0xff]  ;;  %v183_v41 = vld [vmem:[%s1504_s16 + $0x68] sm:$0xff]  ;;  %v184_v43 = vld [vmem:[%s1504_s16 + $0x70] sm:$0xff]  ;;  %v1411_v11 = vmov 0.0|0.0   ;;  %p1348_p12 = pnand %p1347_p11, %p1471_p5  ;;  %p1355_p2 = por %p1354_p1, %p1353_p0 }
  0x1e   : > { %1228 = vmatprep.subr.msk.bf16.mxu0 %vm1508_vm1, %v1226_v14  ;;  %v1256_v42 = vpack.c.bf16 %v183_v41, %v182_v40  ;;  %v185_v44 = vld [vmem:[%s1504_s16 + $0x78] sm:$0xff]  ;;  %v195_v8 = vld [vmem:[%s1736_s1 + $0x48] sm:$0xff]  ;;  %v196_v9 = vld [vmem:[%s1736_s1 + $0x50] sm:$0xff] }
  0x1f   : > { %416 = vperm.xlu0 %1340, %v213_v19   ;;  %v1262_v45 = vpack.c.bf16 %v185_v44, %v184_v43  ;;  %v197_v10 = vld [vmem:[%s1736_s1 + $0x58] sm:$0xff]  ;;  %p1349_p13 = pneg %p1348_p12 }
  0x20   : > { %421 = vperm.xlu1 %1341, %v214_v21  }
  0x21   : > { %p1356_p3 = pnand %p1355_p2, %p1349_p13 }
  0x23   : > { %426 = vperm.xlu0 %1340, %v215_v22  }
  0x24   : > { %431 = vperm.xlu1 %1341, %v216_v23  }
  0x25   : > { %1231 = vmatpush3.bf16.xpose.msk.msra.mxu0 %vm1508_vm1, %v1226_v14 }
  0x26   : > { %1234 = vmatprep.subr.msk.bf16.mxu0 %vm1508_vm1, %v1232_v20 }
  0x27   : > { %574 = vperm.xlu0 %1340, %v217_v26  }
  0x28   : > { %579 = vperm.xlu1 %1341, %v218_v28  }
  0x2b   : > { %584 = vperm.xlu0 %1340, %v219_v29  }
  0x2c   : > { %682 = vperm.xlu1 %1341, %v220_v30  }
  0x2d   : > { %1237 = vmatpush3.bf16.xpose.msk.msra.mxu0 %vm1508_vm1, %v1232_v20 }
  0x2e   : > { %1240 = vmatprep.subr.msk.bf16.mxu0 %vm1508_vm1, %v1238_v27 }
  0x2f   : > { %687 = vperm.xlu0 %1340, %v221_v33  }
  0x30   : > { %776 = vperm.xlu1 %1341, %v222_v35  }
  0x33   : > { %860 = vperm.xlu0 %1340, %v223_v36  }
  0x35   : > { %1243 = vmatpush3.bf16.xpose.msk.msra.mxu0 %vm1508_vm1, %v1238_v27 }
  0x36   : > { %1246 = vmatprep.subr.msk.bf16.mxu0 %vm1508_vm1, %v1244_v34 }
  0x3d   : > { %1249 = vmatpush3.bf16.xpose.msk.msra.mxu0 %vm1508_vm1, %v1244_v34 }
  0x3e   : > { %1252 = vmatprep.subr.msk.bf16.mxu0 %vm1508_vm1, %v1250_v39 }
  0x45   : > { %1255 = vmatpush3.bf16.xpose.msk.msra.mxu0 %vm1508_vm1, %v1250_v39 }
  0x46   : > { %1258 = vmatprep.subr.msk.bf16.mxu0 %vm1508_vm1, %v1256_v42 }
  0x4d   : > { %1261 = vmatpush3.bf16.xpose.msk.msra.mxu0 %vm1508_vm1, %v1256_v42 }
  0x4e   : > { %1264 = vmatprep.subr.msk.bf16.mxu0 %vm1508_vm1, %v1262_v45 }
  0x55   : > { %1267 = vmatpush3.bf16.xpose.msk.msra.mxu0 %vm1508_vm1, %v1262_v45 }
  0x5c   : > { %1149 = vmatmul.mubr.msk.f32.vlgmr.msra.gmra.mrb[0].mxu0 %vm244_vm0, %v187_v46 }
  0x5d   : > { %1151 = vmatprep.mubr.msk.f32.mxu0 %vm244_vm0, %v188_v47 }
  0x60   : > { %1152 = vmatmul.mubr.msk.f32.gmra.mrb[2].mxu0 %vm244_vm0, %v189_v48 }
  0x8e   : > { %v227_v50 = vpop.permute.xlu0 %226 }
  0x8f   : > { %v237_v51 = vpop.permute.xlu1 %236 }
  0x92   : > { %v232_v52 = vpop.permute.xlu0 %231 }
  0x93   : > { %v242_v58 = vpop.permute.xlu1 %241 }
  0x96   : > { %v397_v14 = vpop.permute.xlu0 %396 }
  0x97   : > { %v402_v13 = vpop.permute.xlu1 %401 }
  0x9a   : > { %v407_v17 = vpop.permute.xlu0 %406 }
  0x9b   : > { %v412_v15 = vpop.permute.xlu1 %411 }
  0x9e   : > { %v417_v29 = vpop.permute.xlu0 %416 }
  0x9f   : > { %v422_v26 = vpop.permute.xlu1 %421 }
  0xa2   : > { %v427_v41 = vpop.permute.xlu0 %426 }
  0xa3   : > { %v432_v38 = vpop.permute.xlu1 %431 }
 0x12f   : > { %v1150_v53 = vpop.f32.mrb[0].mxu0 }
 0x130   : > { %v377_v54 = vadd.f32 %v1150_v53, %v232_v52  ;;  %v371_v55 = vpop.f32.mrb[1].mxu0  ;;  %v201_v52 = vld [vmem:[%s1736_s1 + $0x78] sm:$0xff] }
 0x131   : > { %v372_v56 = vadd.f32 %v371_v55, %v227_v50  ;;  %v199_v50 = vld [vmem:[%s1736_s1 + $0x68] sm:$0xff]  ;;  %v575_v55 = vpop.permute.xlu0 %574 }
 0x132   : > { %v391_v57 = vmax.f32 %v377_v54, 0.0 }
 0x133   : > { %v390_v59 = vmax.f32 %v372_v56, 0.0  ;;  %v1153_v60 = vpop.f32.mrb[2].mxu0 }
 0x134   : > { %v387_v61 = vadd.f32 %v1153_v60, %v242_v58  ;;  %v381_v62 = vpop.f32.mrb[3].mxu0 }
 0x135   : > { %v382_v63 = vadd.f32 %v381_v62, %v237_v51  ;;  %v1268_v0 = vpack.c.bf16 %v391_v57, %v390_v59  ;;  %v200_v51 = vld [vmem:[%s1736_s1 + $0x70] sm:$0xff]  ;;  %v580_v57 = vpop.permute.xlu1 %579 }
 0x136   : > { %v393_v1 = vmax.f32 %v387_v61, 0.0 }
 0x137   : > { %v392_v2 = vmax.f32 %v382_v63, 0.0  ;;  %1269 = vmatprep.subr.bf16.mxu1 %v1268_v0  ;;  %v585_v63 = vpop.permute.xlu0 %584 }
 0x138   : > { %1271 = vmatpush3.bf16.msra.mxu1 %v1268_v0 }
 0x139   : > { %v1272_v3 = vpack.c.bf16 %v393_v1, %v392_v2 }
 0x13b   : > { %1273 = vmatprep.subr.bf16.mxu1 %v1272_v3 }
 0x13c   : > { %1275 = vmatpush3.bf16.msra.mxu1 %v1272_v3 }
 0x13d   : > { %1276 = vmatprep.subr.bf16.mxu1 %v1411_v11 }
 0x13f   : > { %1163 = vmatmul.mubr.msk.f32.vlgmr.msra.gmra.mrb[0].mxu1 %vm434_vm2, %v191_v4 }
 0x140   : > { %1165 = vmatprep.mubr.msk.f32.mxu1 %vm434_vm2, %v192_v5  ;;  %v202_v5 = vld [vmem:[%s1736_s1 + $0x80] sm:$0xff] }
 0x143   : > { %1166 = vmatmul.mubr.msk.f32.gmra.mrb[2].mxu1 %vm434_vm2, %v193_v6  ;;  %v688_v6 = vpop.permute.xlu0 %687 }
 0x144   : > { %1168 = vmatprep.mubr.msk.f32.mxu1 %vm434_vm2, %v194_v7 }
 0x147   : > { %1169 = vmatmul.mubr.msk.f32.gmra.mrb[4].mxu1 %vm434_vm2, %v195_v8  ;;  %v683_v8 = vpop.permute.xlu1 %682 }
 0x148   : > { %1171 = vmatprep.mubr.msk.f32.mxu1 %vm434_vm2, %v196_v9 }
 0x14b   : > { %1172 = vmatmul.mubr.msk.f32.gmra.mrb[6].mxu1 %vm434_vm2, %v197_v10 }
 0x14c   : > { %1190 = vmatprep.mubr.msk.f32.mxu1 %vm1412_vm3, %v1413_v12 }
 0x212   : > { %v1164_v16 = vpop.f32.mrb[0].mxu1 }
 0x213   : > { %v531_v18 = vadd.f32 %v1164_v16, %v402_v13  ;;  %v525_v19 = vpop.f32.mrb[1].mxu1 }
 0x214   : > { %v526_v20 = vadd.f32 %v525_v19, %v397_v14 }
 0x215   : > { %v565_v21 = vmax.f32 %v531_v18, 0.0 }
 0x216   : > { %v564_v22 = vmax.f32 %v526_v20, 0.0  ;;  %v1167_v23 = vpop.f32.mrb[2].mxu1 }
 0x217   : > { %v541_v24 = vadd.f32 %v1167_v23, %v412_v15  ;;  %v535_v25 = vpop.f32.mrb[3].mxu1  ;;  %v861_v23 = vpop.permute.xlu0 %860 }
 0x218   : > { %v1277_v27 = vpack.c.bf16 %v565_v21, %v564_v22  ;;  %v536_v28 = vadd.f32 %v535_v25, %v407_v17  ;;  %v777_v17 = vpop.permute.xlu1 %776  ;;  %v204_v22 = vld [vmem:[%s1736_s1 + $0x90] sm:$0xff] }
 0x219   : > { %v567_v30 = vmax.f32 %v541_v24, 0.0 }
 0x21a   : > { %v566_v31 = vmax.f32 %v536_v28, 0.0  ;;  %v1170_v32 = vpop.f32.mrb[4].mxu1  ;;  %1278 = vmatpush3.bf16.msra.mxu1 %v1277_v27 }
 0x21b   : > { %v551_v33 = vadd.f32 %v1170_v32, %v422_v26  ;;  %v545_v34 = vpop.f32.mrb[5].mxu1  ;;  %1279 = vmatprep.subr.bf16.mxu1 %v1411_v11 }
 0x21c   : > { %v1280_v35 = vpack.c.bf16 %v567_v30, %v566_v31  ;;  %v546_v36 = vadd.f32 %v545_v34, %v417_v29 }
 0x21d   : > { %v569_v37 = vmax.f32 %v551_v33, 0.0 }
 0x21e   : > { %v568_v39 = vmax.f32 %v546_v36, 0.0  ;;  %v1173_v40 = vpop.f32.mrb[6].mxu1  ;;  %1281 = vmatpush3.bf16.msra.mxu1 %v1280_v35 }
 0x21f   : > { %v561_v42 = vadd.f32 %v1173_v40, %v432_v38  ;;  %v555_v43 = vpop.f32.mrb[7].mxu1  ;;  %1282 = vmatprep.subr.bf16.mxu1 %v1411_v11 }
 0x220   : > { %v1283_v44 = vpack.c.bf16 %v569_v37, %v568_v39  ;;  %v556_v45 = vadd.f32 %v555_v43, %v427_v41 }
 0x221   : > { %v571_v46 = vmax.f32 %v561_v42, 0.0 }
 0x222   : > { %v570_v47 = vmax.f32 %v556_v45, 0.0  ;;  %1284 = vmatpush3.bf16.msra.mxu1 %v1283_v44 }
 0x223   : > { %1285 = vmatprep.subr.bf16.mxu1 %v1411_v11 }
 0x224   : > { %v1286_v48 = vpack.c.bf16 %v571_v46, %v570_v47 }
 0x226   : > { %1287 = vmatpush3.bf16.msra.mxu1 %v1286_v48 }
 0x229   : > { %1191 = vmatmul.mubr.msk.f32.vlgmr.msra.gmra.mrb[8].mxu1 %vm587_vm4, %v198_v49 }
 0x22a   : > { %1193 = vmatprep.mubr.msk.f32.mxu1 %vm1412_vm3, %v1413_v12 }
 0x22d   : > { %1194 = vmatmul.mubr.msk.f32.gmra.mrb[10].mxu1 %vm587_vm4, %v199_v50 }
 0x22e   : > { %1196 = vmatprep.mubr.msk.f32.mxu1 %vm1412_vm3, %v1413_v12 }
 0x231   : > { %1197 = vmatmul.mubr.msk.f32.gmra.mrb[12].mxu1 %vm587_vm4, %v200_v51 }
 0x232   : > { %1205 = vmatprep.mubr.msk.f32.mxu1 %vm690_vm5, %v201_v52 }
 0x2fc   : > { %v663_v53 = vpop.f32.mrb[8].mxu1 }
 0x2fd   : > { %v1192_v54 = vpop.f32.mrb[9].mxu1  ;;  %v664_v56 = vadd.f32 %v663_v53, %v575_v55 }
 0x2ff   : > { %v677_v61 = vmax.f32 %v664_v56, 0.0 }
 0x300   : > { %v668_v58 = vpop.f32.mrb[10].mxu1 }
 0x301   : > { %v669_v59 = vadd.f32 %v668_v58, %v580_v57  ;;  %v1195_v60 = vpop.f32.mrb[11].mxu1 }
 0x303   : > { %v678_v62 = vmax.f32 %v669_v59, 0.0 }
 0x304   : > { %v673_v0 = vpop.f32.mrb[12].mxu1 }
 0x305   : > { %v1288_v1 = vpack.c.bf16 %v678_v62, %v677_v61  ;;  %v674_v2 = vadd.f32 %v673_v0, %v585_v63  ;;  %v1198_v3 = vpop.f32.mrb[13].mxu1 }
 0x307   : > { %v679_v4 = vmax.f32 %v674_v2, 0.0  ;;  %1289 = vmatprep.subr.bf16.mxu1 %v1288_v1 }
 0x308   : > { %1291 = vmatpush3.bf16.msra.mxu1 %v1288_v1 }
 0x309   : > { %1203 = vmatprep.subr.mxu1 %v679_v4 }
 0x30c   : > { %1204 = vmatpush3.msra.mxu1 %v679_v4 }
 0x30d   : > { %1206 = vmatmul.mubr.msk.f32.vlgmr.msra.gmra.mrb[14].mxu1 %vm690_vm5, %v202_v5  ;;  %1292 = vmatprep.subr.bf16.mxu1 %v1411_v11  ;;  %v203_v11 = vld [vmem:[%s1736_s1 + $0x88] sm:$0xff] }
 0x30e   : > { %1212 = vmatprep.mubr.msk.f32.mxu1 %vm1412_vm3, %v1413_v12 }
 0x3e0   : > { %v1207_v7 = vpop.f32.mrb[14].mxu1 }
 0x3e1   : > { %v769_v9 = vadd.f32 %v1207_v7, %v688_v6  ;;  %v763_v10 = vpop.f32.mrb[15].mxu1 }
 0x3e2   : > { %v764_v13 = vadd.f32 %v763_v10, %v683_v8 }
 0x3e3   : > { %v773_v14 = vmax.f32 %v769_v9, 0.0 }
 0x3e4   : > { %v772_v15 = vmax.f32 %v764_v13, 0.0 }
 0x3e6   : > { %v1293_v16 = vpack.c.bf16 %v773_v14, %v772_v15 }
 0x3e8   : > { %1295 = vmatpush3.bf16.msk.msra.mxu1 %vm1294_vm8, %v1293_v16 }
 0x3e9   : > { %1215 = vmatprep.subr.mxu1 %v1413_v12 }
 0x3eb   : > { %1213 = vmatmul.mubr.msk.f32.vlgmr.msra.gmra.mrb[16].mxu1 %vm779_vm9, %v203_v11 }
 0x3ec   : > { %1217 = vmatprep.mubr.msk.f32.mxu1 %vm1412_vm3, %v1413_v12 }
 0x4be   : > { %v853_v18 = vpop.f32.mrb[16].mxu1 }
 0x4bf   : > { %v854_v19 = vadd.f32 %v853_v18, %v777_v17  ;;  %v1214_v20 = vpop.f32.mrb[17].mxu1 }
 0x4c1   : > { %v857_v21 = vmax.f32 %v854_v19, 0.0 }
 0x4c3   : > { %1216 = vmatpush3.msk.msra.mxu1 %vm867_vm10, %v857_v21 }
 0x4c4   : > { %1218 = vmatmul.mubr.msk.f32.vlgmr.msra.gmra.mrb[18].mxu1 %vm863_vm11, %v204_v22 }
 0x597   : > { %v937_v24 = vpop.f32.mrb[18].mxu1 }
 0x598   : > { %v938_v25 = vadd.f32 %v937_v24, %v861_v23  ;;  %v1219_v26 = vpop.f32.mrb[19].mxu1 }
 0x59a   : > { %v1059_v12 = vmul.f32 -1.442695, %v938_v25 }
 0x59c   : > { %1342 = vpow2.f32 %v1059_v12 }
 0x5a6   : > { %v1343_v27 = vpop.eup %1342 }
 0x5a7   : > { %v944_v28 = vadd.f32 1.0, %v1343_v27 }
 0x5a9   : > { %1344 = vrcp.f32 %v944_v28 }
 0x5b3   : > { %v1345_v29 = vpop.eup %1344 }
 0x5b4   : > { %947 = vst [vmem:[%s163_s9] sm:$0x1] %v1345_v29 }
 0x5b5   : > { %1359 = shalt.err (!%p1356_p3)
}
 0x5b6   : > { %s1360_s24 = scalar_lea.hbm %s1693_s17, 16  ;;  %s1364_s30 = scalar_lea.hbm %s1738_s3, 64 }
 0x5b7   : > { %p1361_p4 = scmp.ne.s32.totalorder %s1693_s17, %s1360_s24  ;;  %p1365_p9 = scmp.lt.u32.totalorder %s1693_s17, %s1738_s3 }
 0x5b8   : > { %p1366_p10 = scmp.lt.u32.totalorder %s1364_s30, %s1360_s24  ;;  %p1368_p12 = scmp.lt.u32.totalorder %s1360_s24, %s1693_s17 }
 0x5b9   : > { %p1362_p7 = pnand %p1361_p4, %p1471_p5 }
 0x5ba   : > { %p1367_p11 = por %p1366_p10, %p1365_p9 }
 0x5bb   : > { %p1363_p8 = pneg %p1362_p7 }
 0x5bc   : > { %p1369_p13 = por %p1368_p12, %p1367_p11 }
 0x5be   : > { %p1370_p0 = pnand %p1369_p13, %p1363_p8 }
 0x5c0   : > { %1373 = shalt.err (!%p1370_p0)
}
 0x5c1   : > { %1296 = dma.vmem_to_hbm [thread:$0]  (%p1471_p5), %s1695_s10, 16, %s1693_s17, %s949_s19  }
 0x5c2 PF: > { %p1302_p1 = scmp.ge.s32.totalorder %s1408_s15, 2  ;;  %s973_s6 = sand.u32 1, %s1396_s12  }
 0x5c3   : > { %s974_s7 = scalar_lea.sflag [#allocation3], %s973_s6 }
 0x5c4   : > { %p1299_p2 = pnand %p1302_p1, %p1475_p6 }
 0x5c6   : > { %1391 = dma.done.wait (!%p1299_p2), %s974_s7, 16  }
 0x5c7   : > { %1393 = vsyncadd (!%p1299_p2), %s974_s7, 4294967280  ;;  %p13_p3 = scmp.ge.s32.totalorder %s1459_s18, 6   ;;  %s1743_s12 = smov %s1400_s13 }
 0x5c8   : > { %s1744_s13 = smov %s1404_s14  ;;  %s1745_s14 = smov %s1469_s21 }
 0x5c9   : > { %s1746_s15 = smov %s1459_s18  ;;  %15 = sbr.rel (!%p13_p3) target bundleno = 3 (0x3), region = 67 }
 0x5d0   :  { %978 = vsyncpa [#allocation3], 1 }
 0x5d1   :  { %980 = vsyncpa [#allocation3 + $0x1], 1 }

</bundles_post_ra>
